<compile_context>
chip_gen: v7x
topology: tpu7x:2x2x1
jax: 0.10.0
libtpu: 0.0.40
codegen_flags: <defaults>
</compile_context>

<pallas_src>
import functools

import jax
import jax.numpy as jnp
from jax.experimental import pallas as pl
from jax.experimental.pallas import tpu as pltpu

LANES = 128
ROW_ALIGN = 32            # lcm of f32 (8-row) and int8 (32-row) sublane tiling
CHUNK_ROWS = 32           # rows per inner-loop step: 1 int8 tile, 4 f32 vregs/stream
MAX_TILE_ROWS = 4096      # ~10.5 MiB input / grid step, ~21 MiB double-buffered
NUM_SUMS = 7

# partial-sum slot meaning
(_S_LF0_SQ,   # voiced-only squared lf0 error
 _S_VCNT,     # voiced count
 _S_TPV,      # TP of voiced prediction  (pred_v & voiced)
 _S_PVCNT,    # predicted-voiced count   (pred_v)
 _S_TPU,      # TP of unvoiced prediction (pred_u & ~voiced)
 _S_PUCNT,    # predicted-unvoiced count (pred_u)
 _S_VOL_SQ,   # volume squared error
 ) = range(NUM_SUMS)


def _evaluator_kernel(lf0_ref, vuv_ref, vol_ref, tlf0_ref, tvol_ref, voiced_ref,
                      out_ref, *, n, tile_rows, num_blocks):
    """One grid step: reduce a (tile_rows, 128) tile into (NUM_SUMS, 8, 128) partials."""
    num_chunks = tile_rows // CHUNK_ROWS
    chunk_elems = CHUNK_ROWS * LANES
    i = pl.program_id(0)

    def chunk_partials(c, masked):
        r0 = c * CHUNK_ROWS
        if not isinstance(r0, int):
            r0 = pl.multiple_of(r0, CHUNK_ROWS)
        sl = (pl.ds(r0, CHUNK_ROWS), slice(None))
        lf0 = lf0_ref[sl]
        vuv = vuv_ref[sl]
        vol = vol_ref[sl]
        tlf0 = tlf0_ref[sl]
        tvol = tvol_ref[sl]
        voiced = voiced_ref[sl] != 0          # int8 -> bool

        pred_v = vuv >= 0.5                   # output >= 0.5
        pred_u = vuv <= 0.5                   # (1 - output) >= 0.5
        unvoiced = jnp.logical_not(voiced)

        d_lf0 = lf0 - tlf0
        d_vol = vol - tvol
        sq_lf0 = d_lf0 * d_lf0
        sq_vol = d_vol * d_vol

        if masked:
            # Only the single chunk straddling element index n ever runs this.
            row = jax.lax.broadcasted_iota(jnp.int32, (CHUNK_ROWS, LANES), 0)
            lane = jax.lax.broadcasted_iota(jnp.int32, (CHUNK_ROWS, LANES), 1)
            # int32 element index; assumes total frame count < 2**31.
            idx = (i * tile_rows + r0 + row) * LANES + lane
            valid = idx < n
            vmask = valid & voiced
            uvmask = valid & unvoiced
            pvmask = valid & pred_v
            pumask = valid & pred_u
            sq_vol = jnp.where(valid, sq_vol, 0.0)
        else:
            vmask = voiced
            uvmask = unvoiced
            pvmask = pred_v
            pumask = pred_u

        def red(x):
            # (CHUNK_ROWS,128) -> (8,128) pure-VPU sublane-group reduction.
            return jnp.sum(x.reshape(CHUNK_ROWS // 8, 8, LANES), axis=0)

        f32 = jnp.float32
        return (
            red(jnp.where(vmask, sq_lf0, 0.0)),      # _S_LF0_SQ
            red(vmask.astype(f32)),                  # _S_VCNT
            red((vmask & pred_v).astype(f32)),       # _S_TPV
            red(pvmask.astype(f32)),                 # _S_PVCNT
            red((uvmask & pred_u).astype(f32)),      # _S_TPU
            red(pumask.astype(f32)),                 # _S_PUCNT
            red(sq_vol),                             # _S_VOL_SQ
        )

    def scan(lo, hi, masked, accs):
        # lo/hi are trace-time Python ints.
        if lo >= hi:
            return accs

        def body(c, a):
            return tuple(x + p for x, p in zip(a, chunk_partials(c, masked)))

        if hi - lo <= 8:                      # tiny range: static unroll
            for c in range(lo, hi):
                accs = body(c, accs)
            return accs
        trips = hi - lo
        unroll = 4 if trips % 4 == 0 else (2 if trips % 2 == 0 else 1)
        return jax.lax.fori_loop(lo, hi, body, accs, unroll=unroll)

    def run(unmasked_hi, loop_hi):
        accs = tuple(jnp.zeros((8, LANES), jnp.float32) for _ in range(NUM_SUMS))
        accs = scan(0, unmasked_hi, False, accs)      # fully-valid chunks: no mask
        accs = scan(unmasked_hi, loop_hi, True, accs)  # the one straddling chunk
        for s in range(NUM_SUMS):
            out_ref[0, s] = accs[s]

    # Static tail bookkeeping (n, tile_rows, num_blocks are trace-time ints).
    last_base = (num_blocks - 1) * tile_rows * LANES
    last_elems = n - last_base                        # in (0, tile_rows*LANES]
    last_unmasked = last_elems // chunk_elems         # chunks fully below n
    last_hi = -(-last_elems // chunk_elems)           # chunks fully past n are skipped

    if num_blocks == 1:
        run(last_unmasked, last_hi)
    elif last_unmasked == num_chunks:
        run(num_chunks, num_chunks)                   # n exactly fills every block
    else:
        @pl.when(i < num_blocks - 1)
        def _():
            run(num_chunks, num_chunks)               # interior blocks: mask-free

        @pl.when(i == num_blocks - 1)
        def _():
            run(last_unmasked, last_hi)               # last block: mask only the tail chunk


@functools.partial(jax.jit, static_argnames=("data_num",))
def evaluator_forward(output_lf0, output_vuv, output_vol,
                      target_lf0, target_vol, voiced, *, data_num: int):
    """JAX/Pallas equivalent of Evaluator.forward (post-generator part)."""
    n = output_lf0.shape[0]
    pad_to = ROW_ALIGN * LANES                        # 4096 elements
    n_pad = ((n + pad_to - 1) // pad_to) * pad_to
    rows = n_pad // LANES                             # multiple of 32
    tile_rows = min(MAX_TILE_ROWS, rows)              # multiple of 32
    num_blocks = -(-rows // tile_rows)

    def prep(x, dtype):
        x = x.astype(dtype)
        if n_pad != n:
            x = jnp.pad(x, (0, n_pad - n))
        return x.reshape(rows, LANES)

    f32_streams = [prep(a, jnp.float32) for a in
                   (output_lf0, output_vuv, output_vol, target_lf0, target_vol)]
    voiced_i8 = prep(voiced, jnp.int8)

    kernel = functools.partial(_evaluator_kernel, n=n, tile_rows=tile_rows,
                               num_blocks=num_blocks)
    tile_spec = pl.BlockSpec((tile_rows, LANES), lambda i: (i, 0))

    bytes_accessed = n_pad * (5 * 4 + 1) + num_blocks * NUM_SUMS * 8 * LANES * 4
    partials = pl.pallas_call(
        kernel,
        out_shape=jax.ShapeDtypeStruct((num_blocks, NUM_SUMS, 8, LANES),
                                       jnp.float32),
        grid=(num_blocks,),
        in_specs=[tile_spec] * 6,
        out_specs=pl.BlockSpec((1, NUM_SUMS, 8, LANES), lambda i: (i, 0, 0, 0)),
        compiler_params=pltpu.CompilerParams(
            # serial loop on 1-TC chips, shardable across v7x's two TensorCores
            dimension_semantics=("parallel",),
            # 4096-row tiles double-buffer to ~21 MiB; raise v5e's 16 MiB default
            vmem_limit_bytes=40 << 20),
        cost_estimate=pl.CostEstimate(flops=30 * n_pad, transcendentals=0,
                                      bytes_accessed=int(bytes_accessed)),
    )(*f32_streams, voiced_i8)

    # Squared-error sums stay in f32; count sums are reduced exactly in int32.
    lf0_sq = jnp.sum(partials[:, _S_LF0_SQ])
    vol_sq = jnp.sum(partials[:, _S_VOL_SQ])
    counts = jnp.sum(partials[:, _S_VCNT:_S_PUCNT + 1].astype(jnp.int32),
                     axis=(0, 2, 3)).astype(jnp.float32)
    vcnt, tpv, pvcnt, tpu, pucnt = (counts[k] for k in range(5))

    n_f = jnp.float32(n)                              # total frame count (static)
    diff_f0 = lf0_sq / vcnt
    precision_voiced = tpv / pvcnt                    # tp / (tp + fp)
    recall_voiced = tpv / vcnt                        # tp / (tp + fn)
    precision_unvoiced = tpu / pucnt
    recall_unvoiced = tpu / (n_f - vcnt)
    diff_vol = vol_sq / n_f
    value = diff_f0 + diff_vol

    return {
        "value": value,
        "diff_f0": diff_f0,
        "precision_voiced": precision_voiced,
        "recall_voiced": recall_voiced,
        "precision_unvoiced": precision_unvoiced,
        "recall_unvoiced": recall_unvoiced,
        "diff_vol": diff_vol,
        "data_num": data_num,
    }


def _reference(output_lf0, output_vuv, output_vol, target_lf0, target_vol, voiced):
    """Pure-JAX reference mirroring the PyTorch forward for sanity checking."""
    vm = voiced
    diff_f0 = jnp.sum(jnp.where(vm, (output_lf0 - target_lf0) ** 2, 0.0)) / jnp.sum(vm)

    def pr(out, tgt):
        pred = out >= 0.5
        tp = jnp.sum(pred & tgt).astype(jnp.float32)
        fp = jnp.sum(pred & ~tgt).astype(jnp.float32)
        fn = jnp.sum(~pred & tgt).astype(jnp.float32)
        return tp / (tp + fp), tp / (tp + fn)

    pv, rv = pr(output_vuv, vm)
    pu, ru = pr(1.0 - output_vuv, ~vm)
    diff_vol = jnp.mean((output_vol - target_vol) ** 2)
    return diff_f0, pv, rv, pu, ru, diff_vol


def _make_inputs(key, n):
    k = jax.random.split(key, 8)
    noise_lf0 = jax.random.normal(k[0], (n,), dtype=jnp.float32)
    noise_vuv = jax.random.normal(k[1], (n,), dtype=jnp.float32)
    noise_vol = jax.random.normal(k[2], (n,), dtype=jnp.float32)

    # TODO(synk): deterministic stand-in for the external diffusion Generator.
    output_lf0 = jnp.tanh(noise_lf0) * 2.0 + 5.0
    output_vuv = jax.nn.sigmoid(noise_vuv)
    output_vol = 0.5 * noise_vol

    # ground-truth data (data['voiced'], data['target_lf0'], data['target_vol'])
    voiced = jax.random.uniform(k[3], (n,)) > 0.4
    target_lf0 = jnp.tanh(jax.random.normal(k[4], (n,))) * 2.0 + 5.0
    target_vol = 0.5 * jax.random.normal(k[5], (n,))
    return output_lf0, output_vuv, output_vol, target_lf0, target_vol, voiced


def _check(args, data_num):
    out = evaluator_forward(*args, data_num=data_num)
    jax.block_until_ready(out["value"])
    ref = _reference(*args)
    got = (out["diff_f0"], out["precision_voiced"], out["recall_voiced"],
           out["precision_unvoiced"], out["recall_unvoiced"], out["diff_vol"])
    for g, r in zip(got, ref):
        assert jnp.allclose(g, r, rtol=1e-5, atol=1e-5), (g, r)
    assert jnp.allclose(out["value"], ref[0] + ref[5], rtol=1e-5, atol=1e-5)
    return out


if __name__ == "__main__":
    key = jax.random.PRNGKey(0)

    # Small case: batch of 2 utterances, 1000 frames each (concatenated as torch.cat does).
    B, L = 2, 1000
    _check(_make_inputs(key, B * L), data_num=B)

    # Larger case exercising the multi-block grid, the fori_loop fast path and
    # the masked tail chunk of the (partial) last block.
    _check(_make_inputs(jax.random.PRNGKey(1), 700_000), data_num=2)

    print("KERNEL_OK")
</pallas_src>

<mosaic_0001>
module attributes {stable_mosaic.version = 11 : i64} {
  func.func @_evaluator_kernel(%arg0: i32, %arg1: memref<32x128xf32, #tpu.memory_space<vmem>>, %arg2: memref<32x128xf32, #tpu.memory_space<vmem>>, %arg3: memref<32x128xf32, #tpu.memory_space<vmem>>, %arg4: memref<32x128xf32, #tpu.memory_space<vmem>>, %arg5: memref<32x128xf32, #tpu.memory_space<vmem>>, %arg6: memref<32x128xi8, #tpu.memory_space<vmem>>, %arg7: memref<1x7x8x128xf32, #tpu.memory_space<vmem>>) attributes {dimension_semantics = [#tpu.dimension_semantics<parallel>], iteration_bounds = array<i64: 1>, scalar_prefetch = 0 : i64, scratch_operands = 0 : i64, tpu.core_type = #tpu.core_type<tc>, window_params = [{transform_indices = @transform_0, window_bounds = array<i64: 32, 128>}, {transform_indices = @transform_1, window_bounds = array<i64: 32, 128>}, {transform_indices = @transform_2, window_bounds = array<i64: 32, 128>}, {transform_indices = @transform_3, window_bounds = array<i64: 32, 128>}, {transform_indices = @transform_4, window_bounds = array<i64: 32, 128>}, {transform_indices = @transform_5, window_bounds = array<i64: 32, 128>}, {transform_indices = @transform_6, window_bounds = array<i64: 1, 7, 8, 128>}]} {
    %cst = arith.constant 0.000000e+00 : f32
    %0 = vector.broadcast %cst : f32 to vector<8x128xf32>
    %cst_0 = arith.constant 0.000000e+00 : f32
    %1 = vector.broadcast %cst_0 : f32 to vector<8x128xf32>
    %cst_1 = arith.constant 0.000000e+00 : f32
    %2 = vector.broadcast %cst_1 : f32 to vector<8x128xf32>
    %cst_2 = arith.constant 0.000000e+00 : f32
    %3 = vector.broadcast %cst_2 : f32 to vector<8x128xf32>
    %cst_3 = arith.constant 0.000000e+00 : f32
    %4 = vector.broadcast %cst_3 : f32 to vector<8x128xf32>
    %cst_4 = arith.constant 0.000000e+00 : f32
    %5 = vector.broadcast %cst_4 : f32 to vector<8x128xf32>
    %cst_5 = arith.constant 0.000000e+00 : f32
    %6 = vector.broadcast %cst_5 : f32 to vector<8x128xf32>
    %c0 = arith.constant 0 : index
    %c0_6 = arith.constant 0 : index
    %7 = vector.load %arg1[%c0, %c0_6] : memref<32x128xf32, #tpu.memory_space<vmem>>, vector<32x128xf32>
    %c0_7 = arith.constant 0 : index
    %c0_8 = arith.constant 0 : index
    %8 = vector.load %arg2[%c0_7, %c0_8] : memref<32x128xf32, #tpu.memory_space<vmem>>, vector<32x128xf32>
    %c0_9 = arith.constant 0 : index
    %c0_10 = arith.constant 0 : index
    %9 = vector.load %arg3[%c0_9, %c0_10] : memref<32x128xf32, #tpu.memory_space<vmem>>, vector<32x128xf32>
    %c0_11 = arith.constant 0 : index
    %c0_12 = arith.constant 0 : index
    %10 = vector.load %arg4[%c0_11, %c0_12] : memref<32x128xf32, #tpu.memory_space<vmem>>, vector<32x128xf32>
    %c0_13 = arith.constant 0 : index
    %c0_14 = arith.constant 0 : index
    %11 = vector.load %arg5[%c0_13, %c0_14] : memref<32x128xf32, #tpu.memory_space<vmem>>, vector<32x128xf32>
    %c0_15 = arith.constant 0 : index
    %c0_16 = arith.constant 0 : index
    %12 = vector.load %arg6[%c0_15, %c0_16] : memref<32x128xi8, #tpu.memory_space<vmem>>, vector<32x128xi8>
    %c0_i8 = arith.constant 0 : i8
    %13 = vector.broadcast %c0_i8 : i8 to vector<32x128xi8>
    %14 = arith.cmpi ne, %12, %13 : vector<32x128xi8>
    %cst_17 = arith.constant 5.000000e-01 : f32
    %15 = vector.broadcast %cst_17 : f32 to vector<32x128xf32>
    %16 = arith.cmpf oge, %8, %15 : vector<32x128xf32>
    %cst_18 = arith.constant 5.000000e-01 : f32
    %17 = vector.broadcast %cst_18 : f32 to vector<32x128xf32>
    %18 = arith.cmpf ole, %8, %17 : vector<32x128xf32>
    %cst_19 = arith.constant dense<true> : vector<32x128xi1>
    %19 = arith.xori %14, %cst_19 : vector<32x128xi1>
    %20 = arith.subf %7, %10 : vector<32x128xf32>
    %21 = arith.subf %9, %11 : vector<32x128xf32>
    %22 = arith.mulf %20, %20 : vector<32x128xf32>
    %23 = arith.mulf %21, %21 : vector<32x128xf32>
    %24 = tpu.iota {dimensions = array<i32: 0>} : vector<32x128xi32>
    %25 = tpu.iota {dimensions = array<i32: 1>} : vector<32x128xi32>
    %c32_i32 = arith.constant 32 : i32
    %26 = arith.muli %arg0, %c32_i32 : i32
    %c0_i32 = arith.constant 0 : i32
    %27 = arith.addi %26, %c0_i32 : i32
    %28 = vector.broadcast %27 : i32 to vector<32x128xi32>
    %29 = arith.addi %28, %24 : vector<32x128xi32>
    %c128_i32 = arith.constant 128 : i32
    %30 = vector.broadcast %c128_i32 : i32 to vector<32x128xi32>
    %31 = arith.muli %29, %30 : vector<32x128xi32>
    %32 = arith.addi %31, %25 : vector<32x128xi32>
    %c2000_i32 = arith.constant 2000 : i32
    %33 = vector.broadcast %c2000_i32 : i32 to vector<32x128xi32>
    %34 = arith.cmpi slt, %32, %33 : vector<32x128xi32>
    %35 = arith.andi %34, %14 : vector<32x128xi1>
    %36 = arith.andi %34, %19 : vector<32x128xi1>
    %37 = arith.andi %34, %16 : vector<32x128xi1>
    %38 = arith.andi %34, %18 : vector<32x128xi1>
    %cst_20 = arith.constant 0.000000e+00 : f32
    %39 = vector.broadcast %cst_20 : f32 to vector<32x128xf32>
    %40 = arith.select %34, %23, %39 : vector<32x128xi1>, vector<32x128xf32>
    %cst_21 = arith.constant 0.000000e+00 : f32
    %41 = vector.broadcast %cst_21 : f32 to vector<32x128xf32>
    %42 = arith.select %35, %22, %41 : vector<32x128xi1>, vector<32x128xf32>
    %43 = vector.shape_cast %42 : vector<32x128xf32> to vector<4x8x128xf32>
    %cst_22 = arith.constant dense<0.000000e+00> : vector<8x128xf32>
    %44 = vector.multi_reduction <add>, %43, %cst_22 [0] : vector<4x8x128xf32> to vector<8x128xf32>
    %45 = arith.extui %35 : vector<32x128xi1> to vector<32x128xi32>
    %46 = arith.sitofp %45 : vector<32x128xi32> to vector<32x128xf32>
    %47 = vector.shape_cast %46 : vector<32x128xf32> to vector<4x8x128xf32>
    %cst_23 = arith.constant dense<0.000000e+00> : vector<8x128xf32>
    %48 = vector.multi_reduction <add>, %47, %cst_23 [0] : vector<4x8x128xf32> to vector<8x128xf32>
    %49 = arith.andi %35, %16 : vector<32x128xi1>
    %50 = arith.extui %49 : vector<32x128xi1> to vector<32x128xi32>
    %51 = arith.sitofp %50 : vector<32x128xi32> to vector<32x128xf32>
    %52 = vector.shape_cast %51 : vector<32x128xf32> to vector<4x8x128xf32>
    %cst_24 = arith.constant dense<0.000000e+00> : vector<8x128xf32>
    %53 = vector.multi_reduction <add>, %52, %cst_24 [0] : vector<4x8x128xf32> to vector<8x128xf32>
    %54 = arith.extui %37 : vector<32x128xi1> to vector<32x128xi32>
    %55 = arith.sitofp %54 : vector<32x128xi32> to vector<32x128xf32>
    %56 = vector.shape_cast %55 : vector<32x128xf32> to vector<4x8x128xf32>
    %cst_25 = arith.constant dense<0.000000e+00> : vector<8x128xf32>
    %57 = vector.multi_reduction <add>, %56, %cst_25 [0] : vector<4x8x128xf32> to vector<8x128xf32>
    %58 = arith.andi %36, %18 : vector<32x128xi1>
    %59 = arith.extui %58 : vector<32x128xi1> to vector<32x128xi32>
    %60 = arith.sitofp %59 : vector<32x128xi32> to vector<32x128xf32>
    %61 = vector.shape_cast %60 : vector<32x128xf32> to vector<4x8x128xf32>
    %cst_26 = arith.constant dense<0.000000e+00> : vector<8x128xf32>
    %62 = vector.multi_reduction <add>, %61, %cst_26 [0] : vector<4x8x128xf32> to vector<8x128xf32>
    %63 = arith.extui %38 : vector<32x128xi1> to vector<32x128xi32>
    %64 = arith.sitofp %63 : vector<32x128xi32> to vector<32x128xf32>
    %65 = vector.shape_cast %64 : vector<32x128xf32> to vector<4x8x128xf32>
    %cst_27 = arith.constant dense<0.000000e+00> : vector<8x128xf32>
    %66 = vector.multi_reduction <add>, %65, %cst_27 [0] : vector<4x8x128xf32> to vector<8x128xf32>
    %67 = vector.shape_cast %40 : vector<32x128xf32> to vector<4x8x128xf32>
    %cst_28 = arith.constant dense<0.000000e+00> : vector<8x128xf32>
    %68 = vector.multi_reduction <add>, %67, %cst_28 [0] : vector<4x8x128xf32> to vector<8x128xf32>
    %69 = arith.addf %0, %44 : vector<8x128xf32>
    %70 = arith.addf %1, %48 : vector<8x128xf32>
    %71 = arith.addf %2, %53 : vector<8x128xf32>
    %72 = arith.addf %3, %57 : vector<8x128xf32>
    %73 = arith.addf %4, %62 : vector<8x128xf32>
    %74 = arith.addf %5, %66 : vector<8x128xf32>
    %75 = arith.addf %6, %68 : vector<8x128xf32>
    %c0_29 = arith.constant 0 : index
    %c0_30 = arith.constant 0 : index
    %c0_31 = arith.constant 0 : index
    %c0_32 = arith.constant 0 : index
    %76 = vector.load %arg7[%c0_29, %c0_30, %c0_31, %c0_32] : memref<1x7x8x128xf32, #tpu.memory_space<vmem>>, vector<1x1x8x128xf32>
    %77 = vector.shape_cast %76 : vector<1x1x8x128xf32> to vector<8x128xf32>
    %78 = vector.shape_cast %69 : vector<8x128xf32> to vector<1x1x8x128xf32>
    tpu.vector_store %arg7[%c0_29, %c0_30, %c0_31, %c0_32], %78 {strides = array<i32>} : memref<1x7x8x128xf32, #tpu.memory_space<vmem>>, vector<1x1x8x128xf32>,
    %c0_33 = arith.constant 0 : index
    %c1 = arith.constant 1 : index
    %c0_34 = arith.constant 0 : index
    %c0_35 = arith.constant 0 : index
    %79 = vector.load %arg7[%c0_33, %c1, %c0_34, %c0_35] : memref<1x7x8x128xf32, #tpu.memory_space<vmem>>, vector<1x1x8x128xf32>
    %80 = vector.shape_cast %79 : vector<1x1x8x128xf32> to vector<8x128xf32>
    %81 = vector.shape_cast %70 : vector<8x128xf32> to vector<1x1x8x128xf32>
    tpu.vector_store %arg7[%c0_33, %c1, %c0_34, %c0_35], %81 {strides = array<i32>} : memref<1x7x8x128xf32, #tpu.memory_space<vmem>>, vector<1x1x8x128xf32>,
    %c0_36 = arith.constant 0 : index
    %c2 = arith.constant 2 : index
    %c0_37 = arith.constant 0 : index
    %c0_38 = arith.constant 0 : index
    %82 = vector.load %arg7[%c0_36, %c2, %c0_37, %c0_38] : memref<1x7x8x128xf32, #tpu.memory_space<vmem>>, vector<1x1x8x128xf32>
    %83 = vector.shape_cast %82 : vector<1x1x8x128xf32> to vector<8x128xf32>
    %84 = vector.shape_cast %71 : vector<8x128xf32> to vector<1x1x8x128xf32>
    tpu.vector_store %arg7[%c0_36, %c2, %c0_37, %c0_38], %84 {strides = array<i32>} : memref<1x7x8x128xf32, #tpu.memory_space<vmem>>, vector<1x1x8x128xf32>,
    %c0_39 = arith.constant 0 : index
    %c3 = arith.constant 3 : index
    %c0_40 = arith.constant 0 : index
    %c0_41 = arith.constant 0 : index
    %85 = vector.load %arg7[%c0_39, %c3, %c0_40, %c0_41] : memref<1x7x8x128xf32, #tpu.memory_space<vmem>>, vector<1x1x8x128xf32>
    %86 = vector.shape_cast %85 : vector<1x1x8x128xf32> to vector<8x128xf32>
    %87 = vector.shape_cast %72 : vector<8x128xf32> to vector<1x1x8x128xf32>
    tpu.vector_store %arg7[%c0_39, %c3, %c0_40, %c0_41], %87 {strides = array<i32>} : memref<1x7x8x128xf32, #tpu.memory_space<vmem>>, vector<1x1x8x128xf32>,
    %c0_42 = arith.constant 0 : index
    %c4 = arith.constant 4 : index
    %c0_43 = arith.constant 0 : index
    %c0_44 = arith.constant 0 : index
    %88 = vector.load %arg7[%c0_42, %c4, %c0_43, %c0_44] : memref<1x7x8x128xf32, #tpu.memory_space<vmem>>, vector<1x1x8x128xf32>
    %89 = vector.shape_cast %88 : vector<1x1x8x128xf32> to vector<8x128xf32>
    %90 = vector.shape_cast %73 : vector<8x128xf32> to vector<1x1x8x128xf32>
    tpu.vector_store %arg7[%c0_42, %c4, %c0_43, %c0_44], %90 {strides = array<i32>} : memref<1x7x8x128xf32, #tpu.memory_space<vmem>>, vector<1x1x8x128xf32>,
    %c0_45 = arith.constant 0 : index
    %c5 = arith.constant 5 : index
    %c0_46 = arith.constant 0 : index
    %c0_47 = arith.constant 0 : index
    %91 = vector.load %arg7[%c0_45, %c5, %c0_46, %c0_47] : memref<1x7x8x128xf32, #tpu.memory_space<vmem>>, vector<1x1x8x128xf32>
    %92 = vector.shape_cast %91 : vector<1x1x8x128xf32> to vector<8x128xf32>
    %93 = vector.shape_cast %74 : vector<8x128xf32> to vector<1x1x8x128xf32>
    tpu.vector_store %arg7[%c0_45, %c5, %c0_46, %c0_47], %93 {strides = array<i32>} : memref<1x7x8x128xf32, #tpu.memory_space<vmem>>, vector<1x1x8x128xf32>,
    %c0_48 = arith.constant 0 : index
    %c6 = arith.constant 6 : index
    %c0_49 = arith.constant 0 : index
    %c0_50 = arith.constant 0 : index
    %94 = vector.load %arg7[%c0_48, %c6, %c0_49, %c0_50] : memref<1x7x8x128xf32, #tpu.memory_space<vmem>>, vector<1x1x8x128xf32>
    %95 = vector.shape_cast %94 : vector<1x1x8x128xf32> to vector<8x128xf32>
    %96 = vector.shape_cast %75 : vector<8x128xf32> to vector<1x1x8x128xf32>
    tpu.vector_store %arg7[%c0_48, %c6, %c0_49, %c0_50], %96 {strides = array<i32>} : memref<1x7x8x128xf32, #tpu.memory_space<vmem>>, vector<1x1x8x128xf32>,
    return
  }
  func.func @transform_0(%arg0: i32) -> (i32, i32) {
    %c0_i32 = arith.constant 0 : i32
    %c0_i32_0 = arith.constant 0 : i32
    return %arg0, %c0_i32 : i32, i32
  }
  func.func @transform_1(%arg0: i32) -> (i32, i32) {
    %c0_i32 = arith.constant 0 : i32
    %c0_i32_0 = arith.constant 0 : i32
    return %arg0, %c0_i32 : i32, i32
  }
  func.func @transform_2(%arg0: i32) -> (i32, i32) {
    %c0_i32 = arith.constant 0 : i32
    %c0_i32_0 = arith.constant 0 : i32
    return %arg0, %c0_i32 : i32, i32
  }
  func.func @transform_3(%arg0: i32) -> (i32, i32) {
    %c0_i32 = arith.constant 0 : i32
    %c0_i32_0 = arith.constant 0 : i32
    return %arg0, %c0_i32 : i32, i32
  }
  func.func @transform_4(%arg0: i32) -> (i32, i32) {
    %c0_i32 = arith.constant 0 : i32
    %c0_i32_0 = arith.constant 0 : i32
    return %arg0, %c0_i32 : i32, i32
  }
  func.func @transform_5(%arg0: i32) -> (i32, i32) {
    %c0_i32 = arith.constant 0 : i32
    %c0_i32_0 = arith.constant 0 : i32
    return %arg0, %c0_i32 : i32, i32
  }
  func.func @transform_6(%arg0: i32) -> (i32, i32, i32, i32) {
    %c0_i32 = arith.constant 0 : i32
    %c0_i32_0 = arith.constant 0 : i32
    %c0_i32_1 = arith.constant 0 : i32
    %c0_i32_2 = arith.constant 0 : i32
    return %arg0, %c0_i32, %c0_i32_0, %c0_i32_1 : i32, i32, i32, i32
  }
}

</mosaic_0001>

<bundles_post_ra>
// kernel: evaluator_forward.1
= control target key start
LH: loop header
LB: loop body
LE: loop exit
PB: predicated region body
PF: predicated region fallthrough
CT: control target
= control target key end

     0   :  { %v72_v0 = vlaneseq  ;;  %v301_v28 = vmov 0   ;;  %v302_v49 = vmov 0.0   ;;  %s636_s0 = inlined_call_operand.vmem [shape: f32[32,128], index: 0, kind: input, shape index: {}]   ;;  %s637_s3 = inlined_call_operand.vmem [shape: f32[32,128], index: 3, kind: input, shape index: {}]   ;;  %s638_s5 = inlined_call_operand.vmem [shape: s8[32,128], index: 5, kind: input, shape index: {}]   ;;  %s639_s1 = inlined_call_operand.vmem [shape: f32[32,128], index: 1, kind: input, shape index: {}]   ;;  %s640_s6 = inlined_call_operand.vmem [shape: f32[1,7,8,128], index: 6, kind: output, shape index: {}]   ;;  %s641_s2 = inlined_call_operand.vmem [shape: f32[32,128], index: 2, kind: input, shape index: {}]   ;;  %s642_s4 = inlined_call_operand.vmem [shape: f32[32,128], index: 4, kind: input, shape index: {}]  }
   0x1   :  { %v25_v1 = vld [vmem:[%s636_s0] sm:$0xff]  ;;  %v26_v2 = vld [vmem:[%s636_s0 + $0x8] sm:$0xff]  ;;  %v27_v3 = vld [vmem:[%s636_s0 + $0x10] sm:$0xff] }
   0x2   :  { %v28_v4 = vld [vmem:[%s636_s0 + $0x18] sm:$0xff]  ;;  %v37_v5 = vld [vmem:[%s637_s3] sm:$0xff]  ;;  %v38_v6 = vld [vmem:[%s637_s3 + $0x8] sm:$0xff]  ;;  %v73_v7 = vshrl.u32 %v72_v0, 7  ;;  %v78_v13 = vand.u32 127, %v72_v0 }
   0x3   :  { %v39_v8 = vld [vmem:[%s637_s3 + $0x10] sm:$0xff]  ;;  %v40_v9 = vld [vmem:[%s637_s3 + $0x18] sm:$0xff]  ;;  %v366_v10 = vld [vmem:[%s638_s5] sm:$0xff]  ;;  %v56_v11 = vsub.f32 %v25_v1, %v37_v5  ;;  %v57_v12 = vsub.f32 %v26_v2, %v38_v6 }
   0x4   :  { %vm46_vm0 = vnez %v366_v10  ;;  %v58_v14 = vsub.f32 %v27_v3, %v39_v8  ;;  %v59_v15 = vsub.f32 %v28_v4, %v40_v9  ;;  %v74_v16 = vadd.s32 8, %v73_v7  ;;  %v372_v17 = vld [vmem:[%s639_s1] sm:$0xff]  ;;  %v397_v38 = vld [vmem:[%s639_s1 + $0x8] sm:$0xff]  ;;  %v402_v39 = vld [vmem:[%s639_s1 + $0x10] sm:$0xff] }
   0x5   :  { %v374_v18 = vmul.f32 %v56_v11, %v56_v11  ;;  %v376_v19 = vmul.f32 %v57_v12, %v57_v12  ;;  %v75_v20 = vadd.s32 16, %v73_v7  ;;  %v76_v21 = vadd.s32 24, %v73_v7  ;;  %v409_v42 = vld [vmem:[%s639_s1 + $0x18] sm:$0xff]  ;;  %v35_v0 = vld [vmem:[%s641_s2 + $0x10] sm:$0xff] }
   0x6   :  { %v378_v22 = vmul.f32 %v58_v14, %v58_v14  ;;  %v380_v23 = vmul.f32 %v59_v15, %v59_v15  ;;  %v85_v24 = vmul.u32 128, %v73_v7  ;;  %v86_v25 = vmul.u32 128, %v74_v16  ;;  %v43_v1 = vld [vmem:[%s642_s4 + $0x10] sm:$0xff] }
   0x7   :  { %v87_v26 = vmul.u32 128, %v75_v20  ;;  %v88_v27 = vmul.u32 128, %v76_v21  ;;  %v97_v29 = vsel %vm46_vm0, 16843009, %v301_v28  ;;  %vm643_vm1 = vcmp.ge.f32.partialorder %v372_v17, 0.5 }
   0x8   :  { %v386_v30 = vadd.s32 %v85_v24, %v78_v13  ;;  %v388_v31 = vadd.s32 %v86_v25, %v78_v13  ;;  %v98_v32 = vunpack.c.0.s8 %v97_v29  ;;  %v99_v33 = vunpack.c.1.s8 %v97_v29 }
   0x9   :  { %v390_v34 = vadd.s32 %v87_v26, %v78_v13  ;;  %v392_v35 = vadd.s32 %v88_v27, %v78_v13  ;;  %v100_v36 = vunpack.c.2.s8 %v97_v29  ;;  %v101_v37 = vunpack.c.3.s8 %v97_v29 }
   0xa   :  { %vm647_vm2 = vcmp.lt.s32.totalorder %v386_v30, 2000  ;;  %vm94_vm3 = vcmp.lt.s32.totalorder %v388_v31, 2000  ;;  %v102_v40 = vpack.c.b16 %v98_v32, %v98_v32  ;;  %v104_v41 = vpack.c.b16 %v99_v33, %v99_v33 }
   0xb   :  { %vm95_vm4 = vcmp.lt.s32.totalorder %v390_v34, 2000  ;;  %vm648_vm5 = vcmp.lt.s32.totalorder %v392_v35, 2000  ;;  %v106_v43 = vpack.c.b16 %v100_v36, %v100_v36  ;;  %v108_v44 = vpack.c.b16 %v101_v37, %v101_v37  ;;  %vm163_vm6 = vmand %vm647_vm2, %vm643_vm1 }
   0xc   :  { %v103_v45 = vpack.c.b8 %v102_v40, %v102_v40  ;;  %v105_v46 = vpack.c.b8 %v104_v41, %v104_v41  ;;  %vm48_vm7 = vcmp.ge.f32.partialorder %v397_v38, 0.5  ;;  %vm644_vm8 = vcmp.ge.f32.partialorder %v402_v39, 0.5 }
   0xd   :  { %v107_v47 = vpack.c.b8 %v106_v43, %v106_v43  ;;  %v109_v48 = vpack.c.b8 %v108_v44, %v108_v44  ;;  %vm645_vm9 = vcmp.ge.f32.partialorder %v409_v42, 0.5  ;;  %vm164_vm10 = vmand %vm94_vm3, %vm48_vm7  ;;  %v280_v50 = vsel %vm163_vm6, 1.0, %v302_v49 }
   0xe   :  { %vm110_vm11 = vnez %v103_v45  ;;  %vm111_vm12 = vnez %v105_v46  ;;  %vm165_vm13 = vmand %vm95_vm4, %vm644_vm8  ;;  %v281_v51 = vsel %vm164_vm10, 1.0, %v302_v49  ;;  %vm646_vm14 = vcmp.le.f32.partialorder %v372_v17, 0.5 }
   0xf   :  { %vm112_vm15 = vnez %v107_v47  ;;  %vm113_vm1 = vnez %v109_v48  ;;  %v114_v52 = vsel %vm110_vm11, 16843009, %v301_v28  ;;  %v115_v53 = vsel %vm111_vm12, 16843009, %v301_v28  ;;  %vm166_vm6 = vmand %vm648_vm5, %vm645_vm9 }
  0x10   :  { %v116_v54 = vsel %vm112_vm15, 16843009, %v301_v28  ;;  %v117_v55 = vsel %vm113_vm1, 16843009, %v301_v28  ;;  %v118_v56 = vunpack.c.0.s8 %v114_v52  ;;  %v119_v57 = vunpack.c.0.s8 %v115_v53  ;;  %vm448_vm1 = vmand %vm647_vm2, %vm646_vm14  ;;  %v33_v52 = vld [vmem:[%s641_s2] sm:$0xff] }
  0x11   :  { %v120_v58 = vunpack.c.0.s8 %v116_v54  ;;  %v121_v59 = vunpack.c.0.s8 %v117_v55  ;;  %v282_v60 = vsel %vm165_vm13, 1.0, %v302_v49  ;;  %v283_v61 = vsel %vm166_vm6, 1.0, %v302_v49  ;;  %v41_v53 = vld [vmem:[%s642_s4] sm:$0xff] }
  0x12   :  { %vm303_vm10 = vmmov 1   ;;  %vm122_vm12 = vcmp.ne.s32.totalorder %v118_v56, 0  ;;  %vm123_vm8 = vcmp.ne.s32.totalorder %v119_v57, 0  ;;  %v216_v62 = vadd.f32 %v281_v51, %v280_v50 }
  0x13   :  { %vm55_vm11 = vmxor %vm46_vm0, %vm303_vm10  ;;  %vm52_vm9 = vcmp.le.f32.partialorder %v397_v38, 0.5  ;;  %vm124_vm13 = vcmp.ne.s32.totalorder %v120_v58, 0  ;;  %vm452_vm15 = vcmp.ne.s32.totalorder %v121_v59, 0  ;;  %vm53_vm6 = vcmp.le.f32.partialorder %v402_v39, 0.5  ;;  %v34_v58 = vld [vmem:[%s641_s2 + $0x8] sm:$0xff] }
  0x14   :  { %vm458_vm0 = vmand %vm647_vm2, %vm122_vm12  ;;  %vm54_vm10 = vcmp.le.f32.partialorder %v409_v42, 0.5  ;;  %v217_v5 = vadd.f32 %v282_v60, %v216_v62  ;;  %v130_v6 = vsel %vm55_vm11, 16843009, %v301_v28  ;;  %vm661_vm11 = vcmp.ge.f32.partialorder %v372_v17, 0.5  ;;  %v42_v59 = vld [vmem:[%s642_s4 + $0x8] sm:$0xff] }
  0x15   :  { %vm466_vm14 = vmand %vm94_vm3, %vm123_vm8  ;;  %v175_v3 = vsel %vm458_vm0, %v374_v18, 0.0  ;;  %v272_v4 = vsel %vm458_vm0, 1.0, %v302_v49  ;;  %v131_v10 = vunpack.c.0.s8 %v130_v6  ;;  %v132_v11 = vunpack.c.1.s8 %v130_v6 }
  0x16   :  { %vm479_vm12 = vmand %vm95_vm4, %vm124_vm13  ;;  %v176_v8 = vsel %vm466_vm14, %v376_v19, 0.0  ;;  %v273_v9 = vsel %vm466_vm14, 1.0, %v302_v49  ;;  %v218_v20 = vadd.f32 %v283_v61, %v217_v5  ;;  %v133_v21 = vunpack.c.2.s8 %v130_v6  ;;  %v44_v5 = vld [vmem:[%s642_s4 + $0x18] sm:$0xff] }
  0x17   :  { %vm493_vm8 = vmand %vm648_vm5, %vm452_vm15  ;;  %v177_v13 = vsel %vm479_vm12, %v378_v22, 0.0  ;;  %v179_v14 = vadd.f32 %v176_v8, %v175_v3  ;;  %v274_v15 = vsel %vm479_vm12, 1.0, %v302_v49  ;;  %v190_v16 = vadd.f32 %v273_v9, %v272_v4  ;;  %v36_v4 = vld [vmem:[%s641_s2 + $0x18] sm:$0xff] }
  0x18   :  { %v178_v18 = vsel %vm493_vm8, %v380_v23, 0.0  ;;  %v275_v19 = vsel %vm493_vm8, 1.0, %v302_v49  ;;  %vm193_vm13 = vmand %vm458_vm0, %vm661_vm11  ;;  %v134_v25 = vunpack.c.3.s8 %v130_v6  ;;  %vm662_vm2 = vcmp.ge.f32.partialorder %v402_v39, 0.5  ;;  %294 = vst [vmem:[%s640_s6 + $0x18] sm:$0xff] %v218_v20 }
  0x19   :  { %v180_v22 = vadd.f32 %v179_v14, %v177_v13  ;;  %v191_v24 = vadd.f32 %v274_v15, %v190_v16  ;;  %vm194_vm15 = vmand %vm466_vm14, %vm48_vm7  ;;  %v276_v23 = vsel %vm193_vm13, 1.0, %v302_v49  ;;  %v135_v27 = vpack.c.b16 %v131_v10, %v131_v10 }
  0x1a   :  { %vm195_vm5 = vmand %vm479_vm12, %vm662_vm2  ;;  %v277_v26 = vsel %vm194_vm15, 1.0, %v302_v49  ;;  %v137_v29 = vpack.c.b16 %v132_v11, %v132_v11  ;;  %v139_v32 = vpack.c.b16 %v133_v21, %v133_v21  ;;  %vm663_vm7 = vcmp.ge.f32.partialorder %v409_v42, 0.5 }
  0x1b   :  { %v181_v33 = vadd.f32 %v180_v22, %v178_v18  ;;  %v192_v36 = vadd.f32 %v275_v19, %v191_v24  ;;  %vm196_vm14 = vmand %vm493_vm8, %vm663_vm7  ;;  %v278_v37 = vsel %vm195_vm5, 1.0, %v302_v49  ;;  %v205_v40 = vadd.f32 %v277_v26, %v276_v23 }
  0x1c   :  { %v279_v41 = vsel %vm196_vm14, 1.0, %v302_v49  ;;  %v136_v43 = vpack.c.b8 %v135_v27, %v135_v27  ;;  %v138_v44 = vpack.c.b8 %v137_v29, %v137_v29  ;;  %v140_v45 = vpack.c.b8 %v139_v32, %v139_v32  ;;  %vm168_vm2 = vmand %vm94_vm3, %vm52_vm9 }
  0x1d   :  { %255 = vst [vmem:[%s640_s6] sm:$0xff] %v181_v33  ;;  %292 = vst [vmem:[%s640_s6 + $0x8] sm:$0xff] %v192_v36  ;;  %v206_v46 = vadd.f32 %v278_v37, %v205_v40  ;;  %v141_v47 = vpack.c.b16 %v134_v25, %v134_v25  ;;  %v288_v48 = vsel %vm448_vm1, 1.0, %v302_v49  ;;  %v289_v50 = vsel %vm168_vm2, 1.0, %v302_v49 }
  0x1e   :  { %vm169_vm5 = vmand %vm95_vm4, %vm53_vm6  ;;  %vm143_vm0 = vnez %v136_v43  ;;  %vm144_vm12 = vnez %v138_v44  ;;  %vm145_vm8 = vnez %v140_v45  ;;  %vm664_vm11 = vcmp.lt.s32.totalorder %v392_v35, 2000 }
  0x1f   :  { %vm170_vm13 = vmand %vm664_vm11, %vm54_vm10  ;;  %v290_v51 = vsel %vm169_vm5, 1.0, %v302_v49  ;;  %v207_v54 = vadd.f32 %v279_v41, %v206_v46  ;;  %v142_v55 = vpack.c.b8 %v141_v47, %v141_v47  ;;  %v147_v56 = vsel %vm143_vm0, 16843009, %v301_v28 }
  0x20   :  { %v148_v57 = vsel %vm144_vm12, 16843009, %v301_v28  ;;  %v149_v60 = vsel %vm145_vm8, 16843009, %v301_v28  ;;  %v151_v61 = vunpack.c.0.s8 %v147_v56  ;;  %v291_v63 = vsel %vm170_vm13, 1.0, %v302_v49 }
  0x21   :  { %v152_v62 = vunpack.c.0.s8 %v148_v57  ;;  %293 = vst [vmem:[%s640_s6 + $0x10] sm:$0xff] %v207_v54  ;;  %vm146_vm1 = vnez %v142_v55  ;;  %v153_v2 = vunpack.c.0.s8 %v149_v60  ;;  %v242_v3 = vadd.f32 %v289_v50, %v288_v48 }
  0x22   :  { %v60_v6 = vsub.f32 %v33_v52, %v41_v53  ;;  %v150_v7 = vsel %vm146_vm1, 16843009, %v301_v28  ;;  %vm155_vm15 = vcmp.ne.s32.totalorder %v151_v61, 0  ;;  %v61_v8 = vsub.f32 %v34_v58, %v42_v59 }
  0x23   :  { %vm156_vm7 = vcmp.ne.s32.totalorder %v152_v62, 0  ;;  %v154_v9 = vunpack.c.0.s8 %v150_v7  ;;  %vm157_vm14 = vcmp.ne.s32.totalorder %v153_v2, 0  ;;  %vm665_vm2 = vcmp.lt.s32.totalorder %v386_v30, 2000 }
  0x24   :  { %vm589_vm5 = vmand %vm665_vm2, %vm155_vm15  ;;  %v243_v11 = vadd.f32 %v290_v51, %v242_v3  ;;  %v62_v12 = vsub.f32 %v35_v0, %v43_v1  ;;  %v63_v28 = vsub.f32 %v36_v4, %v44_v5  ;;  %v68_v14 = vmul.f32 %v60_v6, %v60_v6 }
  0x25   :  { %vm595_vm0 = vmand %vm94_vm3, %vm156_vm7  ;;  %v69_v15 = vmul.f32 %v61_v8, %v61_v8  ;;  %vm158_vm12 = vcmp.ne.s32.totalorder %v154_v9, 0  ;;  %vm671_vm15 = vcmp.le.f32.partialorder %v372_v17, 0.5 }
  0x26   :  { %vm161_vm8 = vmand %vm95_vm4, %vm157_vm14  ;;  %v244_v16 = vadd.f32 %v291_v63, %v243_v11  ;;  %v70_v18 = vmul.f32 %v62_v12, %v62_v12  ;;  %v71_v19 = vmul.f32 %v63_v28, %v63_v28 }
  0x27   :  { %vm162_vm13 = vmand %vm664_vm11, %vm158_vm12  ;;  %v172_v21 = vsel %vm94_vm3, %v69_v15, 0.0 }
  0x28   :  { %vm670_vm1 = vmmov %vm665_vm2  ;;  %296 = vst [vmem:[%s640_s6 + $0x28] sm:$0xff] %v244_v16  ;;  %v173_v22 = vsel %vm95_vm4, %v70_v18, 0.0 }
  0x29   :  { %v171_v20 = vsel %vm670_vm1, %v68_v14, 0.0  ;;  %vm219_vm7 = vmand %vm589_vm5, %vm671_vm15 }
  0x2a   :  { %v245_v24 = vadd.f32 %v172_v21, %v171_v20  ;;  %vm220_vm14 = vmand %vm595_vm0, %vm52_vm9  ;;  %v284_v30 = vsel %vm219_vm7, 1.0, %v302_v49 }
  0x2b   :  { %vm672_vm3 = vmmov %vm664_vm11  ;;  %v285_v31 = vsel %vm220_vm14, 1.0, %v302_v49 }
  0x2c   :  { %v174_v17 = vsel %vm672_vm3, %v71_v19, 0.0  ;;  %vm221_vm2 = vmand %vm161_vm8, %vm53_vm6  ;;  %v246_v23 = vadd.f32 %v245_v24, %v173_v22  ;;  %v231_v38 = vadd.f32 %v285_v31, %v284_v30 }
  0x2d   :  { %vm222_vm4 = vmand %vm162_vm13, %vm54_vm10  ;;  %v286_v34 = vsel %vm221_vm2, 1.0, %v302_v49 }
  0x2e   :  { %v287_v25 = vsel %vm222_vm4, 1.0, %v302_v49  ;;  %v247_v26 = vadd.f32 %v246_v23, %v174_v17  ;;  %v232_v27 = vadd.f32 %v286_v34, %v231_v38 }
  0x30   :  { %297 = vst [vmem:[%s640_s6 + $0x30] sm:$0xff] %v247_v26  ;;  %v233_v35 = vadd.f32 %v287_v25, %v232_v27 }
  0x32   :  { %295 = vst [vmem:[%s640_s6 + $0x20] sm:$0xff] %v233_v35 }

</bundles_post_ra>
